<compile_context>
chip_gen: v6e
topology: v6e:2x2x1
jax: 0.10.0
libtpu: 0.0.40
codegen_flags: <defaults>
</compile_context>

<pallas_src>
import functools

import jax
import jax.numpy as jnp
from jax.experimental import pallas as pl
from jax.experimental.pallas import tpu as pltpu

HIDDEN = 128          # fc1 output features
OUT_REAL = 90         # fc2 real output features (30 * 3)
OUT_PAD = 128         # padded MXU N for the fc2 weight
MAX_TILE = 2048       # batch-tile cap: ~8 MiB VMEM/step, safe on v5e/v6e/v7x
MIN_SPLIT = 512       # only split into >=2 grid steps once each step has >=512 rows


def _round_up(x, m):
    return ((x + m - 1) // m) * m


def _batch_tiling(B):
    """Pick (tm, Bp, ntiles).

    Big tiles (amortize per-step overhead), bounded batch-pad waste
    (Bp - B < ntiles*8 + 8), and >= 2 grid steps for large batches so the
    "parallel" grid axis can be sharded across v7x's two TensorCores.
    """
    Bp8 = _round_up(max(B, 1), 8)
    ntiles = pl.cdiv(Bp8, MAX_TILE)
    if ntiles < 2 and Bp8 >= 2 * MIN_SPLIT:
        ntiles = 2
    tm = _round_up(pl.cdiv(Bp8, ntiles), 8)
    return tm, ntiles * tm, ntiles


def _mlp_kernel(d_ref, t_ref, w1a_ref, w1b_ref, b1_ref, w2_ref, b2_ref, o_ref):
    """One batch tile: fused fc1(VPU) -> ReLU -> fc2(MXU) -> bias -> store 90 lanes."""
    d = d_ref[...]                      # (tm, 3) f32
    t = t_ref[...]                      # (tm, 3) f32

    # --- Layer 1 on the VPU: K=6 is far too small for the MXU.  Six broadcast
    #     multiply-adds; the Python loop unrolls at trace time.
    h = b1_ref[...]                     # (1, HIDDEN), broadcasts below
    for k in range(3):
        h = h + d[:, k:k + 1] * w1a_ref[k:k + 1, :]   # (tm,1)*(1,128)
        h = h + t[:, k:k + 1] * w1b_ref[k:k + 1, :]
    h = jnp.maximum(h, 0.0)             # ReLU, (tm, HIDDEN) f32

    # --- Layer 2 on the MXU at N=128 (90 real + 38 zero weight columns), then
    #     keep only the 90 real lanes for the store (masked vst; DMA/HBM is the
    #     binding resource here, not the vst slot).
    o = jnp.dot(h, w2_ref[...], preferred_element_type=jnp.float32)   # (tm, 128)
    o_ref[...] = (o[:, :OUT_REAL] + b2_ref[...]).astype(o_ref.dtype)  # (tm, 90)


@functools.partial(jax.jit, static_argnames=())
def trajectory_predictor(drone_pos, target_pos, params):
    """drone_pos, target_pos: (B, 3) float32.  Returns (B, 30, 3) float32."""
    w1a, w1b = params["w1a"], params["w1b"]           # (3, 128) each
    b1 = params["b1"]                                 # (1, 128)
    w2p = params["w2p"]                               # (128, 128) zero-padded
    b2 = params["b2"]                                 # (1, 90)

    B = drone_pos.shape[0]
    tm, Bp, ntiles = _batch_tiling(B)
    if Bp != B:
        pad = ((0, Bp - B), (0, 0))
        drone_pos = jnp.pad(drone_pos, pad)
        target_pos = jnp.pad(target_pos, pad)

    flops = 2 * Bp * (6 * HIDDEN + HIDDEN * OUT_PAD)
    bytes_accessed = 4 * (2 * Bp * 3 + Bp * OUT_REAL           # activations
                          + 2 * 3 * HIDDEN + HIDDEN            # fc1 w + b
                          + HIDDEN * OUT_PAD + OUT_REAL)       # fc2 w + b

    out = pl.pallas_call(
        _mlp_kernel,
        out_shape=jax.ShapeDtypeStruct((Bp, OUT_REAL), jnp.float32),
        grid_spec=pltpu.PrefetchScalarGridSpec(
            num_scalar_prefetch=0,
            grid=(ntiles,),
            in_specs=[
                # batch-tiled activations
                pl.BlockSpec((tm, 3), lambda i: (i, 0)),            # drone
                pl.BlockSpec((tm, 3), lambda i: (i, 0)),            # target
                # VMEM-resident weights / biases (same block every step)
                pl.BlockSpec((3, HIDDEN), lambda i: (0, 0)),        # w1a
                pl.BlockSpec((3, HIDDEN), lambda i: (0, 0)),        # w1b
                pl.BlockSpec((1, HIDDEN), lambda i: (0, 0)),        # b1
                pl.BlockSpec((HIDDEN, OUT_PAD), lambda i: (0, 0)),  # w2 (padded N)
                pl.BlockSpec((1, OUT_REAL), lambda i: (0, 0)),      # b2
            ],
            out_specs=pl.BlockSpec((tm, OUT_REAL), lambda i: (i, 0)),
        ),
        compiler_params=pltpu.CompilerParams(
            dimension_semantics=("parallel",),                      # dual-TC on v7x
        ),
        cost_estimate=pl.CostEstimate(
            flops=flops, transcendentals=0, bytes_accessed=bytes_accessed),
    )(drone_pos, target_pos, w1a, w1b, b1, w2p, b2)

    # De-pad batch (no-op view when Bp == B) and unflatten: free reshape.
    return out[:B].reshape(B, 30, 3)


def init_params(key):
    """Deterministic init mimicking torch.nn.Linear default U[-1/sqrt(fan_in), +]."""
    k1, k2, k3, k4 = jax.random.split(key, 4)
    bound1 = 1.0 / jnp.sqrt(6.0)
    bound2 = 1.0 / jnp.sqrt(128.0)
    w1 = jax.random.uniform(k1, (6, HIDDEN), jnp.float32, -bound1, bound1)
    b1 = jax.random.uniform(k2, (1, HIDDEN), jnp.float32, -bound1, bound1)
    w2 = jax.random.uniform(k3, (HIDDEN, OUT_REAL), jnp.float32, -bound2, bound2)
    b2 = jax.random.uniform(k4, (1, OUT_REAL), jnp.float32, -bound2, bound2)
    # Split fc1 by input half (drone / target); zero-pad only fc2's WEIGHT to
    # a full 128-lane MXU N tile (the bias / output stay at 90).
    return {
        "w1a": w1[:3, :],
        "w1b": w1[3:, :],
        "b1": b1,
        "w2p": jnp.pad(w2, ((0, 0), (0, OUT_PAD - OUT_REAL))),
        "b2": b2,
    }


def _reference(drone_pos, target_pos, params):
    """Pure-JAX reference matching the PyTorch module."""
    w1 = jnp.concatenate([params["w1a"], params["w1b"]], axis=0)      # (6, 128)
    w2 = params["w2p"][:, :OUT_REAL]
    x = jnp.concatenate([drone_pos, target_pos], axis=1)
    h = jnp.maximum(x @ w1 + params["b1"], 0.0)
    return (h @ w2 + params["b2"]).reshape(drone_pos.shape[0], 30, 3)


if __name__ == "__main__":
    key = jax.random.PRNGKey(0)
    kp, kd, kt = jax.random.split(key, 3)
    params = init_params(kp)

    # Small aligned batch (single-tile path).
    B = 8
    drone_pos = jax.random.normal(kd, (B, 3), jnp.float32)
    target_pos = jax.random.normal(kt, (B, 3), jnp.float32)
    out = jax.block_until_ready(trajectory_predictor(drone_pos, target_pos, params))
    ref = _reference(drone_pos, target_pos, params)
    assert out.shape == (B, 30, 3)
    assert jnp.allclose(out, ref, atol=1e-5, rtol=1e-5)

    # Unaligned batch (exercises the pad-to-tile path).
    B2 = 5
    out2 = jax.block_until_ready(
        trajectory_predictor(drone_pos[:B2], target_pos[:B2], params))
    ref2 = _reference(drone_pos[:B2], target_pos[:B2], params)
    assert out2.shape == (B2, 30, 3)
    assert jnp.allclose(out2, ref2, atol=1e-5, rtol=1e-5)

    # Larger batch (exercises the multi-step grid + adaptive tiling path).
    B3 = 1030
    kd3, kt3 = jax.random.split(jax.random.PRNGKey(1))
    d3 = jax.random.normal(kd3, (B3, 3), jnp.float32)
    t3 = jax.random.normal(kt3, (B3, 3), jnp.float32)
    out3 = jax.block_until_ready(trajectory_predictor(d3, t3, params))
    ref3 = _reference(d3, t3, params)
    assert out3.shape == (B3, 30, 3)
    assert jnp.allclose(out3, ref3, atol=1e-5, rtol=1e-5)

    print("KERNEL_OK")
</pallas_src>

<mosaic_0001>
module attributes {stable_mosaic.version = 11 : i64} {
  func.func @_mlp_kernel(%arg0: i32, %arg1: memref<8x3xf32, #tpu.memory_space<vmem>>, %arg2: memref<8x3xf32, #tpu.memory_space<vmem>>, %arg3: memref<3x128xf32, #tpu.memory_space<vmem>>, %arg4: memref<3x128xf32, #tpu.memory_space<vmem>>, %arg5: memref<1x128xf32, #tpu.memory_space<vmem>>, %arg6: memref<128x128xf32, #tpu.memory_space<vmem>>, %arg7: memref<1x90xf32, #tpu.memory_space<vmem>>, %arg8: memref<8x90xf32, #tpu.memory_space<vmem>>) attributes {dimension_semantics = [#tpu.dimension_semantics<parallel>], iteration_bounds = array<i64: 1>, scalar_prefetch = 0 : i64, scratch_operands = 0 : i64, tpu.core_type = #tpu.core_type<tc>, window_params = [{transform_indices = @transform_0, window_bounds = array<i64: 8, 3>}, {transform_indices = @transform_1, window_bounds = array<i64: 8, 3>}, {pipeline_mode = #tpu.pipeline_mode<synchronous>, transform_indices = @transform_2, window_bounds = array<i64: 3, 128>}, {pipeline_mode = #tpu.pipeline_mode<synchronous>, transform_indices = @transform_3, window_bounds = array<i64: 3, 128>}, {pipeline_mode = #tpu.pipeline_mode<synchronous>, transform_indices = @transform_4, window_bounds = array<i64: 1, 128>}, {pipeline_mode = #tpu.pipeline_mode<synchronous>, transform_indices = @transform_5, window_bounds = array<i64: 128, 128>}, {pipeline_mode = #tpu.pipeline_mode<synchronous>, transform_indices = @transform_6, window_bounds = array<i64: 1, 90>}, {transform_indices = @transform_7, window_bounds = array<i64: 8, 90>}]} {
    %c0 = arith.constant 0 : index
    %c0_0 = arith.constant 0 : index
    %0 = vector.load %arg1[%c0, %c0_0] : memref<8x3xf32, #tpu.memory_space<vmem>>, vector<8x3xf32>
    %c0_1 = arith.constant 0 : index
    %c0_2 = arith.constant 0 : index
    %1 = vector.load %arg2[%c0_1, %c0_2] : memref<8x3xf32, #tpu.memory_space<vmem>>, vector<8x3xf32>
    %c0_3 = arith.constant 0 : index
    %c0_4 = arith.constant 0 : index
    %2 = vector.load %arg5[%c0_3, %c0_4] : memref<1x128xf32, #tpu.memory_space<vmem>>, vector<1x128xf32>
    %3 = vector.extract_strided_slice %0 {offsets = [0, 0], sizes = [8, 1], strides = [1, 1]} : vector<8x3xf32> to vector<8x1xf32>
    %c0_5 = arith.constant 0 : index
    %c0_6 = arith.constant 0 : index
    %4 = vector.load %arg3[%c0_5, %c0_6] : memref<3x128xf32, #tpu.memory_space<vmem>>, vector<1x128xf32>
    %5 = vector.broadcast %3 : vector<8x1xf32> to vector<8x128xf32>
    %6 = vector.broadcast %4 : vector<1x128xf32> to vector<8x128xf32>
    %7 = arith.mulf %5, %6 : vector<8x128xf32>
    %8 = vector.broadcast %2 : vector<1x128xf32> to vector<8x128xf32>
    %9 = arith.addf %8, %7 : vector<8x128xf32>
    %10 = vector.extract_strided_slice %1 {offsets = [0, 0], sizes = [8, 1], strides = [1, 1]} : vector<8x3xf32> to vector<8x1xf32>
    %c0_7 = arith.constant 0 : index
    %c0_8 = arith.constant 0 : index
    %11 = vector.load %arg4[%c0_7, %c0_8] : memref<3x128xf32, #tpu.memory_space<vmem>>, vector<1x128xf32>
    %12 = vector.broadcast %10 : vector<8x1xf32> to vector<8x128xf32>
    %13 = vector.broadcast %11 : vector<1x128xf32> to vector<8x128xf32>
    %14 = arith.mulf %12, %13 : vector<8x128xf32>
    %15 = arith.addf %9, %14 : vector<8x128xf32>
    %16 = vector.extract_strided_slice %0 {offsets = [0, 1], sizes = [8, 1], strides = [1, 1]} : vector<8x3xf32> to vector<8x1xf32>
    %c1 = arith.constant 1 : index
    %c0_9 = arith.constant 0 : index
    %17 = vector.load %arg3[%c1, %c0_9] : memref<3x128xf32, #tpu.memory_space<vmem>>, vector<1x128xf32>
    %18 = vector.broadcast %16 : vector<8x1xf32> to vector<8x128xf32>
    %19 = vector.broadcast %17 : vector<1x128xf32> to vector<8x128xf32>
    %20 = arith.mulf %18, %19 : vector<8x128xf32>
    %21 = arith.addf %15, %20 : vector<8x128xf32>
    %22 = vector.extract_strided_slice %1 {offsets = [0, 1], sizes = [8, 1], strides = [1, 1]} : vector<8x3xf32> to vector<8x1xf32>
    %c1_10 = arith.constant 1 : index
    %c0_11 = arith.constant 0 : index
    %23 = vector.load %arg4[%c1_10, %c0_11] : memref<3x128xf32, #tpu.memory_space<vmem>>, vector<1x128xf32>
    %24 = vector.broadcast %22 : vector<8x1xf32> to vector<8x128xf32>
    %25 = vector.broadcast %23 : vector<1x128xf32> to vector<8x128xf32>
    %26 = arith.mulf %24, %25 : vector<8x128xf32>
    %27 = arith.addf %21, %26 : vector<8x128xf32>
    %28 = vector.extract_strided_slice %0 {offsets = [0, 2], sizes = [8, 1], strides = [1, 1]} : vector<8x3xf32> to vector<8x1xf32>
    %c2 = arith.constant 2 : index
    %c0_12 = arith.constant 0 : index
    %29 = vector.load %arg3[%c2, %c0_12] : memref<3x128xf32, #tpu.memory_space<vmem>>, vector<1x128xf32>
    %30 = vector.broadcast %28 : vector<8x1xf32> to vector<8x128xf32>
    %31 = vector.broadcast %29 : vector<1x128xf32> to vector<8x128xf32>
    %32 = arith.mulf %30, %31 : vector<8x128xf32>
    %33 = arith.addf %27, %32 : vector<8x128xf32>
    %34 = vector.extract_strided_slice %1 {offsets = [0, 2], sizes = [8, 1], strides = [1, 1]} : vector<8x3xf32> to vector<8x1xf32>
    %c2_13 = arith.constant 2 : index
    %c0_14 = arith.constant 0 : index
    %35 = vector.load %arg4[%c2_13, %c0_14] : memref<3x128xf32, #tpu.memory_space<vmem>>, vector<1x128xf32>
    %36 = vector.broadcast %34 : vector<8x1xf32> to vector<8x128xf32>
    %37 = vector.broadcast %35 : vector<1x128xf32> to vector<8x128xf32>
    %38 = arith.mulf %36, %37 : vector<8x128xf32>
    %39 = arith.addf %33, %38 : vector<8x128xf32>
    %cst = arith.constant 0.000000e+00 : f32
    %40 = vector.broadcast %cst : f32 to vector<8x128xf32>
    %41 = arith.maximumf %39, %40 : vector<8x128xf32>
    %c0_15 = arith.constant 0 : index
    %c0_16 = arith.constant 0 : index
    %42 = vector.load %arg6[%c0_15, %c0_16] : memref<128x128xf32, #tpu.memory_space<vmem>>, vector<128x128xf32>
    %cst_17 = arith.constant dense<0.000000e+00> : vector<8x128xf32>
    %43 = tpu.matmul %41, %42, %cst_17 {dimension_numbers = #tpu.dot_dimension_numbers<[1], [0], [0], [1], [0, 0, 1, 1], [], []>} : vector<8x128xf32>, vector<128x128xf32>, vector<8x128xf32> -> vector<8x128xf32>
    %44 = vector.extract_strided_slice %43 {offsets = [0, 0], sizes = [8, 90], strides = [1, 1]} : vector<8x128xf32> to vector<8x90xf32>
    %c0_18 = arith.constant 0 : index
    %c0_19 = arith.constant 0 : index
    %45 = vector.load %arg7[%c0_18, %c0_19] : memref<1x90xf32, #tpu.memory_space<vmem>>, vector<1x90xf32>
    %46 = vector.broadcast %45 : vector<1x90xf32> to vector<8x90xf32>
    %47 = arith.addf %44, %46 : vector<8x90xf32>
    %c0_20 = arith.constant 0 : index
    %c0_21 = arith.constant 0 : index
    %48 = vector.load %arg8[%c0_20, %c0_21] : memref<8x90xf32, #tpu.memory_space<vmem>>, vector<8x90xf32>
    tpu.vector_store %arg8[%c0_20, %c0_21], %47 {strides = array<i32>} : memref<8x90xf32, #tpu.memory_space<vmem>>, vector<8x90xf32>,
    return
  }
  func.func @transform_0(%arg0: i32) -> (i32, i32) {
    %c0_i32 = arith.constant 0 : i32
    %c0_i32_0 = arith.constant 0 : i32
    return %arg0, %c0_i32 : i32, i32
  }
  func.func @transform_1(%arg0: i32) -> (i32, i32) {
    %c0_i32 = arith.constant 0 : i32
    %c0_i32_0 = arith.constant 0 : i32
    return %arg0, %c0_i32 : i32, i32
  }
  func.func @transform_2(%arg0: i32) -> (i32, i32) {
    %c0_i32 = arith.constant 0 : i32
    %c0_i32_0 = arith.constant 0 : i32
    %c0_i32_1 = arith.constant 0 : i32
    return %c0_i32, %c0_i32_0 : i32, i32
  }
  func.func @transform_3(%arg0: i32) -> (i32, i32) {
    %c0_i32 = arith.constant 0 : i32
    %c0_i32_0 = arith.constant 0 : i32
    %c0_i32_1 = arith.constant 0 : i32
    return %c0_i32, %c0_i32_0 : i32, i32
  }
  func.func @transform_4(%arg0: i32) -> (i32, i32) {
    %c0_i32 = arith.constant 0 : i32
    %c0_i32_0 = arith.constant 0 : i32
    %c0_i32_1 = arith.constant 0 : i32
    return %c0_i32, %c0_i32_0 : i32, i32
  }
  func.func @transform_5(%arg0: i32) -> (i32, i32) {
    %c0_i32 = arith.constant 0 : i32
    %c0_i32_0 = arith.constant 0 : i32
    %c0_i32_1 = arith.constant 0 : i32
    return %c0_i32, %c0_i32_0 : i32, i32
  }
  func.func @transform_6(%arg0: i32) -> (i32, i32) {
    %c0_i32 = arith.constant 0 : i32
    %c0_i32_0 = arith.constant 0 : i32
    %c0_i32_1 = arith.constant 0 : i32
    return %c0_i32, %c0_i32_0 : i32, i32
  }
  func.func @transform_7(%arg0: i32) -> (i32, i32) {
    %c0_i32 = arith.constant 0 : i32
    %c0_i32_0 = arith.constant 0 : i32
    return %arg0, %c0_i32 : i32, i32
  }
}

</mosaic_0001>

<bundles_post_ra>
// kernel: trajectory_predictor.1
= control target key start
LH: loop header
LB: loop body
LE: loop exit
PB: predicated region body
PF: predicated region fallthrough
CT: control target
= control target key end

     0   :  { %12 = vsyncpa [#allocation3], 0  ;;  %s313_s24 = smov [#allocation2]   ;;  %s397_s0 = inlined_call_operand.vmem [shape: f32[8,3], index: 0, kind: input, shape index: {}]   ;;  %s398_s1 = inlined_call_operand.vmem [shape: f32[8,3], index: 1, kind: input, shape index: {}]   ;;  %s399_s2 = inlined_call_operand.vmem [shape: f32[3,128], index: 2, kind: input, shape index: {}]   ;;  %s400_s3 = inlined_call_operand.vmem [shape: f32[3,128], index: 3, kind: input, shape index: {}]   ;;  %s401_s4 = inlined_call_operand.vmem [shape: f32[1,128], index: 4, kind: input, shape index: {}]   ;;  %s402_s5 = inlined_call_operand.hbm [shape: f32[128,128], index: 5, kind: input, shape index: {}]   ;;  %s403_s6 = inlined_call_operand.vmem [shape: f32[1,90], index: 6, kind: input, shape index: {}]   ;;  %s404_s7 = inlined_call_operand.vmem [shape: f32[8,90], index: 7, kind: output, shape index: {}]  }
   0x1   :  { %s28_s25 = sshll.u32 %s313_s24, 4  ;;  %s29_s25 = int_to_ptr.vmem [resolvable:$true] %s28_s25 }
   0x2   :  { %s299_s26 = scalar_lea.vmem %s29_s25, 2048  ;;  %p304_p1 = scmp.lt.s32.totalorder %s29_s25, %s29_s25 }
   0x3   :  { %p300_p0 = scmp.ne.s32.totalorder %s29_s25, %s299_s26  ;;  %p305_p2 = scmp.lt.s32.totalorder %s299_s26, %s299_s26 }
   0x5   :  { %p306_p3 = por %p305_p2, %p304_p1 }
   0x7   :  { %p307_p4 = pnand %p306_p3, %p300_p0 }
   0x9   :  { %310 = shalt.err (!%p307_p4)
}
   0xa   :  { %s314_s27 = smov 128   ;;  %s315_s28 = smov 8  }
   0xb   :  { %34 = dma.hbm_to_vmem [thread:$0]  %s402_s5, 2048, %s29_s25, [#allocation3], %s314_s27, %s314_s27, %s315_s28  }
   0xc   :  { %311 = dma.done.wait [#allocation3], 2048  }
   0xd   :  { %312 = vsyncadd [#allocation3], 4294965248  ;;  %v316_v0 = vmov 1   ;;  %v317_v1 = vmov 0   ;;  %v318_v2 = vmov 0.0   ;;  %v40_v3 = vld [vmem:[%s397_s0] sm:$0xff] }
   0xe   :  { %288 = vset.pattern.permute.xlu1 %v316_v0  ;;  %287 = vset.pattern.permute.xlu0 %v317_v1  ;;  %v133_v4 = vld [vmem:[#allocation2 + $0x78] sm:$0xff]  ;;  %v132_v5 = vld [vmem:[#allocation2 + $0x70] sm:$0xff]  ;;  %v41_v6 = vld [vmem:[%s398_s1] sm:$0xff]  ;;  %v319_v9 = vmov 2   ;;  %vm320_vm0 = vmmov 0   ;;  %vm212_vm1 = vcmask 736256  }
   0xf   :  { %244 = vmatprep.subr.mxu0 %v318_v2  ;;  %75 = vperm.xlu1 %288, %v40_v3   ;;  %v131_v7 = vld [vmem:[#allocation2 + $0x68] sm:$0xff]  ;;  %v130_v8 = vld [vmem:[#allocation2 + $0x60] sm:$0xff]  ;;  %v129_v10 = vld [vmem:[#allocation2 + $0x58] sm:$0xff] }
  0x10   :  { %46 = vperm.xlu0 %287, %v40_v3   ;;  %245 = vmatpush3.msra.mxu0 %v133_v4  ;;  %v128_v11 = vld [vmem:[#allocation2 + $0x50] sm:$0xff]  ;;  %v127_v12 = vld [vmem:[#allocation2 + $0x48] sm:$0xff]  ;;  %v126_v13 = vld [vmem:[#allocation2 + $0x40] sm:$0xff] }
  0x11   :  { %246 = vmatprep.subr.mxu0 %v318_v2  ;;  %276 = vmatprep.mubr.msk.f32.mxu0 %vm320_vm0, %v318_v2  ;;  %v125_v14 = vld [vmem:[#allocation2 + $0x38] sm:$0xff]  ;;  %v124_v15 = vld [vmem:[#allocation2 + $0x30] sm:$0xff]  ;;  %v123_v16 = vld [vmem:[#allocation2 + $0x28] sm:$0xff] }
  0x12   :  { %247 = vmatpush3.msra.mxu0 %v132_v5  ;;  %v122_v17 = vld [vmem:[#allocation2 + $0x20] sm:$0xff]  ;;  %v121_v18 = vld [vmem:[#allocation2 + $0x18] sm:$0xff]  ;;  %v120_v19 = vld [vmem:[#allocation2 + $0x10] sm:$0xff] }
  0x13   :  { %86 = vperm.xlu1 %288, %v41_v6   ;;  %248 = vmatprep.subr.mxu0 %v318_v2  ;;  %v119_v20 = vld [vmem:[#allocation2 + $0x8] sm:$0xff]  ;;  %v118_v21 = vld [vmem:[#allocation2] sm:$0xff] }
  0x14   :  { %64 = vperm.xlu0 %287, %v41_v6   ;;  %249 = vmatpush3.msra.mxu0 %v131_v7  ;;  %v219_v22 = vld [vmem:[%s399_s2] ss:$0 sm:$0xff]  ;;  %v222_v28 = vld [vmem:[%s399_s2 + $0x1] ss:$0 sm:$0xff]  ;;  %v224_v36 = vld [vmem:[%s399_s2 + $0x2] ss:$0 sm:$0xff] }
  0x15   :  { %250 = vmatprep.subr.mxu0 %v318_v2  ;;  %v220_v26 = vld [vmem:[%s401_s4] ss:$0 sm:$0xff]  ;;  %v223_v33 = vld [vmem:[%s400_s3 + $0x1] ss:$0 sm:$0xff]  ;;  %v225_v37 = vld [vmem:[%s400_s3 + $0x2] ss:$0 sm:$0xff] }
  0x16   :  { %251 = vmatpush3.msra.mxu0 %v130_v8  ;;  %v221_v27 = vld [vmem:[%s400_s3] ss:$0 sm:$0xff] }
  0x17   :  { %290 = vset.pattern.permute.xlu1 %v319_v9  ;;  %252 = vmatprep.subr.mxu0 %v318_v2  ;;  %v226_v48 = vld [vmem:[%s403_s6] ss:$0 sm:$0xff] }
  0x18   :  { %289 = vset.pattern.permute.xlu0 %v319_v9  ;;  %108 = vperm.xlu1 %290, %v41_v6  }
  0x19   :  { %97 = vperm.xlu0 %289, %v40_v3   ;;  %253 = vmatpush3.msra.mxu0 %v129_v10 }
  0x1a   :  { %254 = vmatprep.subr.mxu0 %v318_v2 }
  0x1b   :  { %255 = vmatpush3.msra.mxu0 %v128_v11 }
  0x1c   :  { %256 = vmatprep.subr.mxu0 %v318_v2 }
  0x1d   :  { %257 = vmatpush3.msra.mxu0 %v127_v12 }
  0x1e   :  { %258 = vmatprep.subr.mxu0 %v318_v2 }
  0x1f   :  { %259 = vmatpush3.msra.mxu0 %v126_v13 }
  0x20   :  { %260 = vmatprep.subr.mxu0 %v318_v2 }
  0x21   :  { %261 = vmatpush3.msra.mxu0 %v125_v14 }
  0x22   :  { %262 = vmatprep.subr.mxu0 %v318_v2 }
  0x23   :  { %263 = vmatpush3.msra.mxu0 %v124_v15 }
  0x24   :  { %264 = vmatprep.subr.mxu0 %v318_v2 }
  0x25   :  { %265 = vmatpush3.msra.mxu0 %v123_v16 }
  0x26   :  { %266 = vmatprep.subr.mxu0 %v318_v2 }
  0x27   :  { %267 = vmatpush3.msra.mxu0 %v122_v17 }
  0x28   :  { %268 = vmatprep.subr.mxu0 %v318_v2 }
  0x29   :  { %269 = vmatpush3.msra.mxu0 %v121_v18 }
  0x2a   :  { %270 = vmatprep.subr.mxu0 %v318_v2 }
  0x2b   :  { %271 = vmatpush3.msra.mxu0 %v120_v19 }
  0x2c   :  { %272 = vmatprep.subr.mxu0 %v318_v2 }
  0x2d   :  { %273 = vmatpush3.msra.mxu0 %v119_v20 }
  0x2e   :  { %274 = vmatprep.subr.mxu0 %v318_v2 }
  0x2f   :  { %275 = vmatpush3.msra.mxu0 %v118_v21 }
  0x8a   :  { %v76_v23 = vpop.permute.xlu1 %75 }
  0x8b   :  { %v47_v24 = vpop.permute.xlu0 %46  ;;  %v82_v34 = vmul.f32 %v222_v28, %v76_v23 }
  0x8c   :  { %v53_v25 = vmul.f32 %v219_v22, %v47_v24 }
  0x8e   :  { %v60_v30 = vadd.f32 %v220_v26, %v53_v25  ;;  %v87_v31 = vpop.permute.xlu1 %86 }
  0x8f   :  { %v65_v29 = vpop.permute.xlu0 %64  ;;  %v93_v38 = vmul.f32 %v223_v33, %v87_v31 }
  0x90   :  { %v71_v32 = vmul.f32 %v221_v27, %v65_v29 }
  0x92   :  { %v72_v35 = vadd.f32 %v71_v32, %v60_v30 }
  0x93   :  { %v109_v41 = vpop.permute.xlu1 %108 }
  0x94   :  { %v83_v39 = vadd.f32 %v82_v34, %v72_v35  ;;  %v98_v40 = vpop.permute.xlu0 %97  ;;  %v115_v44 = vmul.f32 %v225_v37, %v109_v41 }
  0x95   :  { %v104_v42 = vmul.f32 %v224_v36, %v98_v40 }
  0x96   :  { %v94_v43 = vadd.f32 %v93_v38, %v83_v39 }
  0x98   :  { %v105_v45 = vadd.f32 %v104_v42, %v94_v43 }
  0x9a   :  { %v116_v46 = vadd.f32 %v115_v44, %v105_v45 }
  0x9c   :  { %v117_v47 = vmax.f32 %v116_v46, 0.0 }
  0x9e   :  { %277 = vmatmul.mubr.f32.vlgmr.msra.gmra.mxu0 %v117_v47 }
 0x15e   :  { %v200_v49 = vpop.f32.mrf.mxu0 }
 0x15f   :  { %v211_v50 = vadd.f32 %v226_v48, %v200_v49 }
 0x160   :  { %v278_v51 = vpop.f32.mrf.mxu0 }
 0x161   :  { %213 = vst.msk [vmem:[%s404_s7] sm:$0xff] %vm212_vm1, %v211_v50 }
 0x162   :  { %218 = vsyncpa [#allocation3], 1 }

</bundles_post_ra>
